<compile_context>
chip_gen: v5e
topology: v5e:2x2
jax: 0.10.0
libtpu: 0.0.40
codegen_flags: <defaults>
</compile_context>

<pallas_src>
import functools

import jax
import jax.numpy as jnp
from jax.experimental import pallas as pl
from jax.experimental.pallas import tpu as pltpu


def _fp_kernel(num_layers, k, idx_bits, approx_recip, *refs):
    """One grid step == one (batch, N2-tile) pair; channels-first compute."""
    p1_ref, p2t_ref, f1t_ref, f2_ref = refs[:4]
    n_param = 3 + 2 * (num_layers - 1)
    param_refs = refs[4:4 + n_param]
    o_ref = refs[4 + n_param]

    p1 = p1_ref[...]                     # (N1, 3)    f32, VMEM-resident
    p2t = p2t_ref[...]                   # (3, TN2)   f32, streamed tile
    n1 = p1.shape[0]
    tn2 = p2t.shape[1]

    # ---- squared pairwise distances, transposed layout d[n1, n2] -----------
    # Rank-1 broadcast FMAs over the 3 coords (pure VPU).
    # TODO(synk): if the bundle dump shows VALU binding here, move `cross` to
    # the MXU (jnp.dot(p1, p2t), K=3) -- the MXU slot is idle in this phase.
    x1, y1, z1 = p1[:, 0:1], p1[:, 1:2], p1[:, 2:3]          # (N1, 1)
    x2, y2, z2 = p2t[0:1, :], p2t[1:2, :], p2t[2:3, :]       # (1, TN2)
    cross = x1 * x2 + y1 * y2 + z1 * z2                      # (N1, TN2)
    p1_sq = x1 * x1 + y1 * y1 + z1 * z1                      # (N1, 1)
    p2_sq = x2 * x2 + y2 * y2 + z2 * z2                      # (1, TN2)
    d = jnp.maximum(p1_sq + p2_sq - 2.0 * cross, 0.0)        # (N1, TN2), >= 0

    # ---- k-NN selection via int32 packed-key argmin -------------------------
    # key = (distance bits with the low idx_bits replaced by the row index).
    # d >= 0 => int32 ordering of the bits == float ordering (no denormal
    # flush hazard).  One int32 min per round; ties break to the lowest index.
    low_mask = (1 << idx_bits) - 1
    row = jax.lax.broadcasted_iota(jnp.int32, (n1, tn2), 0)  # (N1, TN2)
    keys = (pltpu.bitcast(d, jnp.int32) & ~low_mask) | row   # (N1, TN2) int32
    sentinel = jnp.iinfo(jnp.int32).max                      # > any finite key

    remaining = keys
    for _ in range(k):
        kmin = jnp.min(remaining, axis=0, keepdims=True)     # (1, TN2)
        hit = remaining == kmin                              # exactly one row
        remaining = jnp.where(hit, sentinel, remaining)
    selected = remaining != keys            # rows knocked out == the k nearest

    # ---- inverse-distance weights (exact distances) -------------------------
    d_eps = d + 1e-8
    if approx_recip:
        recip = pl.reciprocal(d_eps, approx=True)            # EUP slot
    else:
        recip = 1.0 / d_eps
    w_unnorm = jnp.where(selected, recip, 0.0)                # (N1, TN2)
    inv_norm = 1.0 / jnp.sum(w_unnorm, axis=0, keepdims=True)  # (1, TN2)

    # ---- interpolation as one MXU matmul, channels-first --------------------
    f1t = f1t_ref[...]                                        # (C1, N1)
    if f1t.dtype == jnp.float32:
        # f32 path: scale the small (C1, TN2) result instead of the big weight
        new_feat = jnp.dot(f1t, w_unnorm,
                           preferred_element_type=jnp.float32)
        new_feat = new_feat * inv_norm
    else:
        # low-precision path: normalise BEFORE the cast (weights in [0, 1])
        w_mat = (w_unnorm * inv_norm).astype(f1t.dtype)
        new_feat = jnp.dot(f1t, w_mat,
                           preferred_element_type=jnp.float32)  # (C1, TN2)

    # ---- MLP: folded conv1x1 + BN + ReLU, channels-first --------------------
    # Layer 0 is split at the [new_feat | features2] concat boundary, so no
    # lane-axis concatenate is ever materialised.
    w0a = param_refs[0][...]                                  # (H1, C1)
    w0b = param_refs[1][...]                                  # (H1, C2)
    b0 = param_refs[2][...]                                   # (H1, 1)  f32
    f2 = f2_ref[...]                                          # (C2, TN2)
    x = (jnp.dot(w0a, new_feat.astype(w0a.dtype),
                 preferred_element_type=jnp.float32)
         + jnp.dot(w0b, f2, preferred_element_type=jnp.float32)
         + b0)
    x = jnp.maximum(x, 0.0)
    for li in range(1, num_layers):
        w = param_refs[1 + 2 * li][...]                       # (Ho, Hi)
        b = param_refs[2 + 2 * li][...]                       # (Ho, 1)  f32
        x = jnp.dot(w, x.astype(w.dtype),
                    preferred_element_type=jnp.float32) + b
        x = jnp.maximum(x, 0.0)

    o_ref[...] = x.astype(o_ref.dtype)            # (Cout, TN2): lane-dense NCW


def _vmem_capacity_bytes():
    """Physical VMEM per core (64 MiB on v7x, 128 MiB on v5e/v6e)."""
    try:
        info = pltpu.get_tpu_info()
        cap = getattr(info, "vmem_capacity_bytes", None)
        if cap:
            return int(cap)
    except Exception:
        pass
    return 64 * 1024 * 1024   # conservative (v7x) fallback


def _pick_tn2(n2, n1, c1, c2, cout, feat_bytes, budget):
    """Largest lane-aligned N2 tile whose full VMEM footprint fits `budget`.

    Accounts for the resident points1/features1, ~6 live (N1, TN2) 32-bit
    intermediates, the low-precision weight-cast buffer, and double-buffered
    streamed points2/features2/output tiles.
    """
    resident = 2 * (n1 * 3 * 4 + c1 * n1 * feat_bytes) + (1 << 16)   # +params
    for cand in (2048, 1024, 512, 256, 128):
        if n2 % cand:
            continue
        interm = 6 * 4 * n1 * cand                    # (N1, TN2) f32/i32 live
        cast = (2 * n1 * cand) if feat_bytes < 4 else 0
        streamed = 2 * cand * (3 * 4 + c2 * feat_bytes + cout * 4)
        if resident + interm + cast + streamed <= budget:
            return cand
    return n2   # tiny / irregular N2: single tile per batch element


def feature_propagation(points1, points2, features1, features2, params, k, *,
                        tn2=None, mxu_dtype=jnp.bfloat16, approx_recip=True,
                        vmem_limit_bytes=None):
    """params: list of (w[out,in], b[out], gamma, beta, run_mean, run_var).

    Production defaults: bf16 MXU operands (f32 accumulation) and EUP approx
    reciprocal.  Pass mxu_dtype=jnp.float32, approx_recip=False for a
    bit-tight (~1e-4) match against the PyTorch reference.
    """
    assert k >= 1
    B, N1, _ = points1.shape
    _, N2, _ = points2.shape
    C1 = features1.shape[-1]
    C2 = features2.shape[1]

    # One-time layout plumbing (tiny relative to the kernel's HBM traffic):
    # points2 -> (B, 3, N2) and features1 -> (B, C1, N1) so the N2 tile / N1
    # axis land on lanes inside the kernel.  features2 and the output stay in
    # their native NCW layout - no wrapper transpose for either.
    p2t = jnp.transpose(points2, (0, 2, 1))                        # (B, 3, N2)
    f1t = jnp.transpose(features1, (0, 2, 1)).astype(mxu_dtype)    # (B, C1, N1)
    f2 = features2.astype(mxu_dtype)                               # (B, C2, N2)

    # Fold Conv2d bias + BatchNorm2d (inference, eps=1e-3) into one affine per
    # layer, keeping the native (out, in) weight orientation.  Biases stay f32.
    folded_w, folded_b = [], []
    for (w, b, gamma, beta, mean, var) in params:
        scale = gamma / jnp.sqrt(var + 1e-3)
        folded_w.append((w * scale[:, None]).astype(mxu_dtype))    # (out, in)
        folded_b.append((beta + scale * (b - mean))[:, None]
                        .astype(jnp.float32))                      # (out, 1)
    num_layers = len(params)
    out_c = folded_w[-1].shape[0]

    # Split the first layer's weight at the [interp | features2] boundary.
    w0a = folded_w[0][:, :C1]                                      # (H1, C1)
    w0b = folded_w[0][:, C1:]                                      # (H1, C2)

    feat_bytes = jnp.dtype(mxu_dtype).itemsize
    vmem_cap = _vmem_capacity_bytes()
    if vmem_limit_bytes is None:
        vmem_limit_bytes = (100 << 20) if vmem_cap >= (96 << 20) else (48 << 20)
    vmem_limit_bytes = min(vmem_limit_bytes, int(vmem_cap * 0.8))

    if tn2 is None:
        tn2 = _pick_tn2(N2, N1, C1, C2, out_c, feat_bytes,
                        budget=int(vmem_limit_bytes * 0.8))
    # v7x has 2 TensorCores: make sure the parallel grid has >= 2 steps.
    if B * (N2 // tn2) < 2 and tn2 == N2 and N2 % 256 == 0:
        tn2 = N2 // 2
    assert N2 % tn2 == 0 and (tn2 % 128 == 0 or tn2 == N2), (N2, tn2)
    n_tiles = N2 // tn2

    idx_bits = max(1, (N1 - 1).bit_length())
    kernel = functools.partial(_fp_kernel, num_layers, k, idx_bits,
                               approx_recip)

    Sq = pl.Squeezed()
    in_specs = [
        # VMEM-resident across the N2-tile axis (constant index_map):
        pl.BlockSpec((Sq, N1, 3), lambda b, n: (b, 0, 0)),     # points1
        pl.BlockSpec((Sq, 3, tn2), lambda b, n: (b, 0, n)),    # points2^T tile
        pl.BlockSpec((Sq, C1, N1), lambda b, n: (b, 0, 0)),    # features1^T
        pl.BlockSpec((Sq, C2, tn2), lambda b, n: (b, 0, n)),   # features2 tile
    ]
    args = [points1, p2t, f1t, f2]
    param_arrays = [w0a, w0b, folded_b[0]]
    for li in range(1, num_layers):
        param_arrays += [folded_w[li], folded_b[li]]
    for arr in param_arrays:
        in_specs.append(pl.BlockSpec(arr.shape, lambda b, n: (0, 0)))
        args.append(arr)

    out = pl.pallas_call(
        kernel,
        out_shape=jax.ShapeDtypeStruct((B, out_c, N2), jnp.float32),
        grid=(B, n_tiles),
        in_specs=in_specs,
        out_specs=pl.BlockSpec((Sq, out_c, tn2), lambda b, n: (b, 0, n)),
        compiler_params=pltpu.CompilerParams(
            dimension_semantics=("parallel", "parallel"),
            vmem_limit_bytes=vmem_limit_bytes),
    )(*args)
    return out   # (B, Cout, N2) NCW -- no wrapper transpose needed


def _reference(points1, points2, features1, features2, params, k):
    """Plain-JAX replica of the PyTorch forward (for a sanity check)."""
    f2 = jnp.transpose(features2, (0, 2, 1))
    d = (-2.0 * jnp.einsum("bnc,bmc->bnm", points2, points1)
         + jnp.sum(points2 ** 2, -1)[..., None]
         + jnp.sum(points1 ** 2, -1)[:, None, :])
    order = jnp.argsort(d, axis=-1)[..., :k]
    dists = jnp.take_along_axis(d, order, axis=-1)
    recip = 1.0 / (dists + 1e-8)
    weight = recip / jnp.sum(recip, axis=-1, keepdims=True)
    grouped = jax.vmap(lambda f, i: f[i])(features1, order)          # (B,N2,k,C1)
    new_feat = jnp.sum(grouped * weight[..., None], axis=2)          # (B,N2,C1)
    x = jnp.concatenate([new_feat, f2], axis=-1)
    for (w, b, gamma, beta, mean, var) in params:
        x = jnp.einsum("bnc,oc->bno", x, w) + b
        x = gamma * (x - mean) / jnp.sqrt(var + 1e-3) + beta
        x = jnp.maximum(x, 0.0)
    return jnp.transpose(x, (0, 2, 1))


if __name__ == "__main__":
    key = jax.random.PRNGKey(0)

    B, N1, N2 = 2, 16, 8
    in_channels1, in_channels2 = 8, 4          # features1 / features2 channels
    out_channels = [16, 32]
    k = 3

    key, kp1, kp2, kf1, kf2 = jax.random.split(key, 5)
    points1 = jax.random.normal(kp1, (B, N1, 3), jnp.float32)
    points2 = jax.random.normal(kp2, (B, N2, 3), jnp.float32)
    features1 = jax.random.normal(kf1, (B, N1, in_channels1), jnp.float32)
    features2 = jax.random.normal(kf2, (B, in_channels2, N2), jnp.float32)

    # Deterministic parameter init (Conv2d 1x1 + BatchNorm2d per layer).
    chans = [in_channels1 + in_channels2] + out_channels
    params = []
    for i in range(1, len(chans)):
        key, k1, k2, k3, k4, k5, k6 = jax.random.split(key, 7)
        c_in, c_out = chans[i - 1], chans[i]
        w = 0.1 * jax.random.normal(k1, (c_out, c_in), jnp.float32)
        b = 0.1 * jax.random.normal(k2, (c_out,), jnp.float32)
        gamma = 1.0 + 0.1 * jax.random.normal(k3, (c_out,), jnp.float32)
        beta = 0.1 * jax.random.normal(k4, (c_out,), jnp.float32)
        mean = 0.1 * jax.random.normal(k5, (c_out,), jnp.float32)
        var = 1.0 + 0.1 * jax.random.uniform(k6, (c_out,), jnp.float32)
        params.append((w, b, gamma, beta, mean, var))

    ref = _reference(points1, points2, features1, features2, params, k)

    # Exact path: f32 MXU operands + exact reciprocal -> tight tolerance.
    out_exact = feature_propagation(points1, points2, features1, features2,
                                    params, k, mxu_dtype=jnp.float32,
                                    approx_recip=False)
    out_exact = jax.block_until_ready(out_exact)
    assert out_exact.shape == (B, out_channels[-1], N2), out_exact.shape
    assert jnp.allclose(out_exact, ref, rtol=1e-4, atol=1e-4), \
        float(jnp.max(jnp.abs(out_exact - ref)))

    # Production path: bf16 MXU operands + EUP approx reciprocal.
    out_fast = feature_propagation(points1, points2, features1, features2,
                                   params, k)
    out_fast = jax.block_until_ready(out_fast)
    assert out_fast.shape == (B, out_channels[-1], N2), out_fast.shape
    assert jnp.allclose(out_fast, ref, rtol=5e-2, atol=5e-2), \
        float(jnp.max(jnp.abs(out_fast - ref)))

    print("KERNEL_OK")
</pallas_src>

<mosaic_0001>
module attributes {stable_mosaic.version = 11 : i64} {
  func.func @_fp_kernel(%arg0: i32, %arg1: i32, %arg2: memref<1x16x3xf32, #tpu.memory_space<vmem>>, %arg3: memref<1x3x8xf32, #tpu.memory_space<vmem>>, %arg4: memref<1x8x16xf32, #tpu.memory_space<vmem>>, %arg5: memref<1x4x8xf32, #tpu.memory_space<vmem>>, %arg6: memref<16x8xf32, #tpu.memory_space<vmem>>, %arg7: memref<16x4xf32, #tpu.memory_space<vmem>>, %arg8: memref<16x1xf32, #tpu.memory_space<vmem>>, %arg9: memref<32x16xf32, #tpu.memory_space<vmem>>, %arg10: memref<32x1xf32, #tpu.memory_space<vmem>>, %arg11: memref<1x32x8xf32, #tpu.memory_space<vmem>>) attributes {dimension_semantics = [#tpu.dimension_semantics<parallel>, #tpu.dimension_semantics<parallel>], iteration_bounds = array<i64: 2, 1>, scalar_prefetch = 0 : i64, scratch_operands = 0 : i64, tpu.core_type = #tpu.core_type<tc>, window_params = [{transform_indices = @transform_0, window_bounds = array<i64: 1, 16, 3>}, {transform_indices = @transform_1, window_bounds = array<i64: 1, 3, 8>}, {transform_indices = @transform_2, window_bounds = array<i64: 1, 8, 16>}, {transform_indices = @transform_3, window_bounds = array<i64: 1, 4, 8>}, {pipeline_mode = #tpu.pipeline_mode<synchronous>, transform_indices = @transform_4, window_bounds = array<i64: 16, 8>}, {pipeline_mode = #tpu.pipeline_mode<synchronous>, transform_indices = @transform_5, window_bounds = array<i64: 16, 4>}, {pipeline_mode = #tpu.pipeline_mode<synchronous>, transform_indices = @transform_6, window_bounds = array<i64: 16, 1>}, {pipeline_mode = #tpu.pipeline_mode<synchronous>, transform_indices = @transform_7, window_bounds = array<i64: 32, 16>}, {pipeline_mode = #tpu.pipeline_mode<synchronous>, transform_indices = @transform_8, window_bounds = array<i64: 32, 1>}, {transform_indices = @transform_9, window_bounds = array<i64: 1, 32, 8>}]} {
    %c0 = arith.constant 0 : index
    %c0_0 = arith.constant 0 : index
    %c0_1 = arith.constant 0 : index
    %0 = vector.load %arg2[%c0, %c0_0, %c0_1] : memref<1x16x3xf32, #tpu.memory_space<vmem>>, vector<1x16x3xf32>
    %1 = vector.shape_cast %0 : vector<1x16x3xf32> to vector<16x3xf32>
    %c0_2 = arith.constant 0 : index
    %c0_3 = arith.constant 0 : index
    %c0_4 = arith.constant 0 : index
    %2 = vector.load %arg3[%c0_2, %c0_3, %c0_4] : memref<1x3x8xf32, #tpu.memory_space<vmem>>, vector<1x3x8xf32>
    %3 = vector.shape_cast %2 : vector<1x3x8xf32> to vector<3x8xf32>
    %4 = vector.extract_strided_slice %1 {offsets = [0, 0], sizes = [16, 1], strides = [1, 1]} : vector<16x3xf32> to vector<16x1xf32>
    %5 = vector.extract_strided_slice %1 {offsets = [0, 1], sizes = [16, 1], strides = [1, 1]} : vector<16x3xf32> to vector<16x1xf32>
    %6 = vector.extract_strided_slice %1 {offsets = [0, 2], sizes = [16, 1], strides = [1, 1]} : vector<16x3xf32> to vector<16x1xf32>
    %7 = vector.extract_strided_slice %3 {offsets = [0, 0], sizes = [1, 8], strides = [1, 1]} : vector<3x8xf32> to vector<1x8xf32>
    %8 = vector.extract_strided_slice %3 {offsets = [1, 0], sizes = [1, 8], strides = [1, 1]} : vector<3x8xf32> to vector<1x8xf32>
    %9 = vector.extract_strided_slice %3 {offsets = [2, 0], sizes = [1, 8], strides = [1, 1]} : vector<3x8xf32> to vector<1x8xf32>
    %10 = vector.broadcast %4 : vector<16x1xf32> to vector<16x8xf32>
    %11 = vector.broadcast %7 : vector<1x8xf32> to vector<16x8xf32>
    %12 = arith.mulf %10, %11 : vector<16x8xf32>
    %13 = vector.broadcast %5 : vector<16x1xf32> to vector<16x8xf32>
    %14 = vector.broadcast %8 : vector<1x8xf32> to vector<16x8xf32>
    %15 = arith.mulf %13, %14 : vector<16x8xf32>
    %16 = arith.addf %12, %15 : vector<16x8xf32>
    %17 = vector.broadcast %6 : vector<16x1xf32> to vector<16x8xf32>
    %18 = vector.broadcast %9 : vector<1x8xf32> to vector<16x8xf32>
    %19 = arith.mulf %17, %18 : vector<16x8xf32>
    %20 = arith.addf %16, %19 : vector<16x8xf32>
    %21 = arith.mulf %4, %4 : vector<16x1xf32>
    %22 = arith.mulf %5, %5 : vector<16x1xf32>
    %23 = arith.addf %21, %22 : vector<16x1xf32>
    %24 = arith.mulf %6, %6 : vector<16x1xf32>
    %25 = arith.addf %23, %24 : vector<16x1xf32>
    %26 = arith.mulf %7, %7 : vector<1x8xf32>
    %27 = arith.mulf %8, %8 : vector<1x8xf32>
    %28 = arith.addf %26, %27 : vector<1x8xf32>
    %29 = arith.mulf %9, %9 : vector<1x8xf32>
    %30 = arith.addf %28, %29 : vector<1x8xf32>
    %31 = vector.broadcast %25 : vector<16x1xf32> to vector<16x8xf32>
    %32 = vector.broadcast %30 : vector<1x8xf32> to vector<16x8xf32>
    %33 = arith.addf %31, %32 : vector<16x8xf32>
    %cst = arith.constant 2.000000e+00 : f32
    %34 = vector.broadcast %cst : f32 to vector<16x8xf32>
    %35 = arith.mulf %34, %20 : vector<16x8xf32>
    %36 = arith.subf %33, %35 : vector<16x8xf32>
    %cst_5 = arith.constant 0.000000e+00 : f32
    %37 = vector.broadcast %cst_5 : f32 to vector<16x8xf32>
    %38 = arith.maximumf %36, %37 : vector<16x8xf32>
    %39 = tpu.iota {dimensions = array<i32: 0>} : vector<16x8xi32>
    %40 = tpu.bitcast %38 : vector<16x8xf32> -> vector<16x8xi32>
    %c-16_i32 = arith.constant -16 : i32
    %41 = vector.broadcast %c-16_i32 : i32 to vector<16x8xi32>
    %42 = arith.andi %40, %41 : vector<16x8xi32>
    %43 = arith.ori %42, %39 : vector<16x8xi32>
    %cst_6 = arith.constant dense<2147483647> : vector<8xi32>
    %44 = vector.multi_reduction <minsi>, %43, %cst_6 [0] : vector<16x8xi32> to vector<8xi32>
    %45 = vector.shape_cast %44 : vector<8xi32> to vector<1x8xi32>
    %46 = vector.broadcast %45 : vector<1x8xi32> to vector<16x8xi32>
    %47 = arith.cmpi eq, %43, %46 : vector<16x8xi32>
    %c2147483647_i32 = arith.constant 2147483647 : i32
    %48 = vector.broadcast %c2147483647_i32 : i32 to vector<16x8xi32>
    %49 = arith.select %47, %48, %43 : vector<16x8xi1>, vector<16x8xi32>
    %cst_7 = arith.constant dense<2147483647> : vector<8xi32>
    %50 = vector.multi_reduction <minsi>, %49, %cst_7 [0] : vector<16x8xi32> to vector<8xi32>
    %51 = vector.shape_cast %50 : vector<8xi32> to vector<1x8xi32>
    %52 = vector.broadcast %51 : vector<1x8xi32> to vector<16x8xi32>
    %53 = arith.cmpi eq, %49, %52 : vector<16x8xi32>
    %c2147483647_i32_8 = arith.constant 2147483647 : i32
    %54 = vector.broadcast %c2147483647_i32_8 : i32 to vector<16x8xi32>
    %55 = arith.select %53, %54, %49 : vector<16x8xi1>, vector<16x8xi32>
    %cst_9 = arith.constant dense<2147483647> : vector<8xi32>
    %56 = vector.multi_reduction <minsi>, %55, %cst_9 [0] : vector<16x8xi32> to vector<8xi32>
    %57 = vector.shape_cast %56 : vector<8xi32> to vector<1x8xi32>
    %58 = vector.broadcast %57 : vector<1x8xi32> to vector<16x8xi32>
    %59 = arith.cmpi eq, %55, %58 : vector<16x8xi32>
    %c2147483647_i32_10 = arith.constant 2147483647 : i32
    %60 = vector.broadcast %c2147483647_i32_10 : i32 to vector<16x8xi32>
    %61 = arith.select %59, %60, %55 : vector<16x8xi1>, vector<16x8xi32>
    %62 = arith.cmpi ne, %61, %43 : vector<16x8xi32>
    %cst_11 = arith.constant 9.99999993E-9 : f32
    %63 = vector.broadcast %cst_11 : f32 to vector<16x8xf32>
    %64 = arith.addf %38, %63 : vector<16x8xf32>
    %cst_12 = arith.constant 1.000000e+00 : f32
    %65 = vector.broadcast %cst_12 : f32 to vector<16x8xf32>
    %66 = arith.divf %65, %64 : vector<16x8xf32>
    %cst_13 = arith.constant 0.000000e+00 : f32
    %67 = vector.broadcast %cst_13 : f32 to vector<16x8xf32>
    %68 = arith.select %62, %66, %67 : vector<16x8xi1>, vector<16x8xf32>
    %cst_14 = arith.constant dense<0.000000e+00> : vector<8xf32>
    %69 = vector.multi_reduction <add>, %68, %cst_14 [0] : vector<16x8xf32> to vector<8xf32>
    %70 = vector.shape_cast %69 : vector<8xf32> to vector<1x8xf32>
    %cst_15 = arith.constant 1.000000e+00 : f32
    %71 = vector.broadcast %cst_15 : f32 to vector<1x8xf32>
    %72 = arith.divf %71, %70 : vector<1x8xf32>
    %c0_16 = arith.constant 0 : index
    %c0_17 = arith.constant 0 : index
    %c0_18 = arith.constant 0 : index
    %73 = vector.load %arg4[%c0_16, %c0_17, %c0_18] : memref<1x8x16xf32, #tpu.memory_space<vmem>>, vector<1x8x16xf32>
    %74 = vector.shape_cast %73 : vector<1x8x16xf32> to vector<8x16xf32>
    %cst_19 = arith.constant dense<0.000000e+00> : vector<8x8xf32>
    %75 = tpu.matmul %74, %68, %cst_19 {dimension_numbers = #tpu.dot_dimension_numbers<[1], [0], [0], [1], [0, 0, 1, 1], [], []>} : vector<8x16xf32>, vector<16x8xf32>, vector<8x8xf32> -> vector<8x8xf32>
    %76 = vector.broadcast %72 : vector<1x8xf32> to vector<8x8xf32>
    %77 = arith.mulf %75, %76 : vector<8x8xf32>
    %c0_20 = arith.constant 0 : index
    %c0_21 = arith.constant 0 : index
    %78 = vector.load %arg6[%c0_20, %c0_21] : memref<16x8xf32, #tpu.memory_space<vmem>>, vector<16x8xf32>
    %c0_22 = arith.constant 0 : index
    %c0_23 = arith.constant 0 : index
    %79 = vector.load %arg7[%c0_22, %c0_23] : memref<16x4xf32, #tpu.memory_space<vmem>>, vector<16x4xf32>
    %c0_24 = arith.constant 0 : index
    %c0_25 = arith.constant 0 : index
    %80 = vector.load %arg8[%c0_24, %c0_25] : memref<16x1xf32, #tpu.memory_space<vmem>>, vector<16x1xf32>
    %c0_26 = arith.constant 0 : index
    %c0_27 = arith.constant 0 : index
    %c0_28 = arith.constant 0 : index
    %81 = vector.load %arg5[%c0_26, %c0_27, %c0_28] : memref<1x4x8xf32, #tpu.memory_space<vmem>>, vector<1x4x8xf32>
    %82 = vector.shape_cast %81 : vector<1x4x8xf32> to vector<4x8xf32>
    %cst_29 = arith.constant dense<0.000000e+00> : vector<16x8xf32>
    %83 = tpu.matmul %78, %77, %cst_29 {dimension_numbers = #tpu.dot_dimension_numbers<[1], [0], [0], [1], [0, 0, 1, 1], [], []>} : vector<16x8xf32>, vector<8x8xf32>, vector<16x8xf32> -> vector<16x8xf32>
    %cst_30 = arith.constant dense<0.000000e+00> : vector<16x8xf32>
    %84 = tpu.matmul %79, %82, %cst_30 {dimension_numbers = #tpu.dot_dimension_numbers<[1], [0], [0], [1], [0, 0, 1, 1], [], []>} : vector<16x4xf32>, vector<4x8xf32>, vector<16x8xf32> -> vector<16x8xf32>
    %85 = arith.addf %83, %84 : vector<16x8xf32>
    %86 = vector.broadcast %80 : vector<16x1xf32> to vector<16x8xf32>
    %87 = arith.addf %85, %86 : vector<16x8xf32>
    %cst_31 = arith.constant 0.000000e+00 : f32
    %88 = vector.broadcast %cst_31 : f32 to vector<16x8xf32>
    %89 = arith.maximumf %87, %88 : vector<16x8xf32>
    %c0_32 = arith.constant 0 : index
    %c0_33 = arith.constant 0 : index
    %90 = vector.load %arg9[%c0_32, %c0_33] : memref<32x16xf32, #tpu.memory_space<vmem>>, vector<32x16xf32>
    %c0_34 = arith.constant 0 : index
    %c0_35 = arith.constant 0 : index
    %91 = vector.load %arg10[%c0_34, %c0_35] : memref<32x1xf32, #tpu.memory_space<vmem>>, vector<32x1xf32>
    %cst_36 = arith.constant dense<0.000000e+00> : vector<32x8xf32>
    %92 = tpu.matmul %90, %89, %cst_36 {dimension_numbers = #tpu.dot_dimension_numbers<[1], [0], [0], [1], [0, 0, 1, 1], [], []>} : vector<32x16xf32>, vector<16x8xf32>, vector<32x8xf32> -> vector<32x8xf32>
    %93 = vector.broadcast %91 : vector<32x1xf32> to vector<32x8xf32>
    %94 = arith.addf %92, %93 : vector<32x8xf32>
    %cst_37 = arith.constant 0.000000e+00 : f32
    %95 = vector.broadcast %cst_37 : f32 to vector<32x8xf32>
    %96 = arith.maximumf %94, %95 : vector<32x8xf32>
    %c0_38 = arith.constant 0 : index
    %c0_39 = arith.constant 0 : index
    %c0_40 = arith.constant 0 : index
    %97 = vector.load %arg11[%c0_38, %c0_39, %c0_40] : memref<1x32x8xf32, #tpu.memory_space<vmem>>, vector<1x32x8xf32>
    %98 = vector.shape_cast %97 : vector<1x32x8xf32> to vector<32x8xf32>
    %99 = vector.shape_cast %96 : vector<32x8xf32> to vector<1x32x8xf32>
    tpu.vector_store %arg11[%c0_38, %c0_39, %c0_40], %99 {strides = array<i32>} : memref<1x32x8xf32, #tpu.memory_space<vmem>>, vector<1x32x8xf32>,
    return
  }
  func.func @transform_0(%arg0: i32, %arg1: i32) -> (i32, i32, i32) {
    %c0_i32 = arith.constant 0 : i32
    %c0_i32_0 = arith.constant 0 : i32
    %c0_i32_1 = arith.constant 0 : i32
    return %arg0, %c0_i32, %c0_i32_0 : i32, i32, i32
  }
  func.func @transform_1(%arg0: i32, %arg1: i32) -> (i32, i32, i32) {
    %c0_i32 = arith.constant 0 : i32
    %c0_i32_0 = arith.constant 0 : i32
    return %arg0, %c0_i32, %arg1 : i32, i32, i32
  }
  func.func @transform_2(%arg0: i32, %arg1: i32) -> (i32, i32, i32) {
    %c0_i32 = arith.constant 0 : i32
    %c0_i32_0 = arith.constant 0 : i32
    %c0_i32_1 = arith.constant 0 : i32
    return %arg0, %c0_i32, %c0_i32_0 : i32, i32, i32
  }
  func.func @transform_3(%arg0: i32, %arg1: i32) -> (i32, i32, i32) {
    %c0_i32 = arith.constant 0 : i32
    %c0_i32_0 = arith.constant 0 : i32
    return %arg0, %c0_i32, %arg1 : i32, i32, i32
  }
  func.func @transform_4(%arg0: i32, %arg1: i32) -> (i32, i32) {
    %c0_i32 = arith.constant 0 : i32
    %c0_i32_0 = arith.constant 0 : i32
    %c0_i32_1 = arith.constant 0 : i32
    return %c0_i32, %c0_i32_0 : i32, i32
  }
  func.func @transform_5(%arg0: i32, %arg1: i32) -> (i32, i32) {
    %c0_i32 = arith.constant 0 : i32
    %c0_i32_0 = arith.constant 0 : i32
    %c0_i32_1 = arith.constant 0 : i32
    return %c0_i32, %c0_i32_0 : i32, i32
  }
  func.func @transform_6(%arg0: i32, %arg1: i32) -> (i32, i32) {
    %c0_i32 = arith.constant 0 : i32
    %c0_i32_0 = arith.constant 0 : i32
    %c0_i32_1 = arith.constant 0 : i32
    return %c0_i32, %c0_i32_0 : i32, i32
  }
  func.func @transform_7(%arg0: i32, %arg1: i32) -> (i32, i32) {
    %c0_i32 = arith.constant 0 : i32
    %c0_i32_0 = arith.constant 0 : i32
    %c0_i32_1 = arith.constant 0 : i32
    return %c0_i32, %c0_i32_0 : i32, i32
  }
  func.func @transform_8(%arg0: i32, %arg1: i32) -> (i32, i32) {
    %c0_i32 = arith.constant 0 : i32
    %c0_i32_0 = arith.constant 0 : i32
    %c0_i32_1 = arith.constant 0 : i32
    return %c0_i32, %c0_i32_0 : i32, i32
  }
  func.func @transform_9(%arg0: i32, %arg1: i32) -> (i32, i32, i32) {
    %c0_i32 = arith.constant 0 : i32
    %c0_i32_0 = arith.constant 0 : i32
    return %arg0, %c0_i32, %arg1 : i32, i32, i32
  }
}

</mosaic_0001>

<bundles_post_ra>
// kernel: tpu_custom_call.1
= control target key start
LH: loop header
LB: loop body
LE: loop exit
PB: predicated region body
PF: predicated region fallthrough
CT: control target
= control target key end

     0   :  { %s1094_s30 = smov 0   ;;  %s1096_s10 = smov 0   ;;  %s1232_s0 = inlined_call_operand.vmem [shape: f32[2,16,3], index: 0, kind: input, shape index: {}]   ;;  %s1233_s1 = inlined_call_operand.vmem [shape: f32[2,3,8], index: 1, kind: input, shape index: {}]   ;;  %s1234_s2 = inlined_call_operand.vmem [shape: f32[2,8,16], index: 2, kind: input, shape index: {}]   ;;  %s1235_s3 = inlined_call_operand.vmem [shape: f32[2,4,8], index: 3, kind: input, shape index: {}]   ;;  %s1236_s4 = inlined_call_operand.vmem [shape: f32[16,8], index: 4, kind: input, shape index: {}]   ;;  %s1237_s5 = inlined_call_operand.vmem [shape: f32[16,4], index: 5, kind: input, shape index: {}]   ;;  %s1238_s6 = inlined_call_operand.vmem [shape: f32[16,1], index: 6, kind: input, shape index: {}]   ;;  %s1239_s7 = inlined_call_operand.vmem [shape: f32[32,16], index: 7, kind: input, shape index: {}]   ;;  %s1240_s8 = inlined_call_operand.vmem [shape: f32[32,1], index: 8, kind: input, shape index: {}]   ;;  %s1241_s9 = inlined_call_operand.vmem [shape: f32[2,32,8], index: 9, kind: output, shape index: {}]  }
   0x1   :  { %s1098_s11 = smov 0  }
   0x2 LB: > { %s31_s12 = sadd.s32 1, %s1033_s10  ;;  %p946_p0 = scmp.ge.s32.totalorder %s1037_s11, 1  ;;  %s1037_s11 = sphi %s1098_s11, %s19_s11   ;;  %s1033_s10 = sphi %s1096_s10, %s1245_s10   ;;  %s1029_s30 = sphi %s1094_s30, %s1244_s30  }
   0x3   : > { %p33_p1 = scmp.ge.s32.totalorder %s31_s12, 2  ;;  %p338_p2 = scmp.lt.s32.totalorder %s1037_s11, 3 }
   0x5   : > { %s1247_s12 = smov (%p33_p1, %s31_s12), 0  ;;  %p339_p3 = pnand %p946_p0, %p338_p2 }
   0x6   : > { %p395_p4 = scmp.lt.s32.totalorder (!%p339_p3), %s1029_s30, 1  ;;  %s1041_s17 = smov (!%p339_p3), 127  }
   0x7   : > { %342 = sbr.rel (%p339_p3) target bundleno = 756 (0x2f4), region = 56  ;;  %s1042_s18 = smov (!%p339_p3), 126  }
   0xc   : > { %v1039_v0 = vmov 1   ;;  %v1040_v1 = vmov 0   ;;  %s1249_s30 = smov (!%p395_p4, %s1029_s30), 1  ;;  %v1043_v6 = vmov 2   ;;  %v666_v14 = vld [vmem:[%s1238_s6] sm:$0xff]  ;;  %v752_v16 = vld [vmem:[%s1240_s8 + $0x10] sm:$0xff]  ;;  %v515_v48 = vlaneseq }
   0xd   : > { %1002 = vset.pattern.permute.xlu0 %v1039_v0  ;;  %1001 = vset.pattern.permute.xlu2 %v1040_v1  ;;  %s968_s13 = sshll.u32 %s1249_s30, 4  ;;  %v751_v17 = vld [vmem:[%s1240_s8 + $0x8] sm:$0xff]  ;;  %s949_s25 = sshll.u32 %s1249_s30, 2  ;;  %vm524_vm0 = vcmask 64512  }
   0xe   : > { %1003 = vset.pattern.permute.xlu1 %v1039_v0  ;;  %s399_s16 = scalar_lea.vmem %s1232_s0, %s968_s13  ;;  %s406_s28 = scalar_lea.vmem %s1233_s1, %s949_s25  ;;  %v516_v53 = vshrl.u32 %v515_v48, 7 }
   0xf   : > { %v426_v2 = vld [vmem:[%s399_s16] sm:$0xff]  ;;  %v427_v4 = vld [vmem:[%s399_s16 + $0x8] sm:$0xff]  ;;  %s950_s29 = sshll.u32 %s1249_s30, 3  ;;  %s969_s24 = sshll.u32 %s1249_s30, 5 }
  0x10   : > { %v468_v3 = vmul.f32 %v426_v2, %v426_v2  ;;  %431 = vperm.xlu2 %1001, %v426_v2   ;;  %v469_v5 = vmul.f32 %v427_v4, %v427_v4  ;;  %v428_v19 = vld [vmem:[%s406_s28] sm:$0x7]  ;;  %v517_v56 = vadd.s32 8, %v516_v53  ;;  %s410_s15 = scalar_lea.vmem %s1234_s2, %s950_s29  ;;  %s425_s27 = scalar_lea.vmem %s1241_s9, %s969_s24 }
  0x11   : > { %v488_v21 = vmul.f32 %v428_v19, %v428_v19  ;;  %v439_v22 = vperm.slane %v428_v19, 0  ;;  %v450_v23 = vperm.slane %v428_v19, 1  ;;  %v463_v26 = vperm.slane %v428_v19, 2 }
  0x12   : > { %472 = vrot.lane.b32.xlu0 %v468_v3, %s1041_s17  ;;  %480 = vrot.lane.b32.xlu1 %v468_v3, %s1042_s18 }
  0x13   : > { %v490_v24 = vrot.slane %v488_v21, 1  ;;  %v493_v31 = vrot.slane %v488_v21, 2 }
  0x15   : > { %v492_v30 = vadd.f32 %v490_v24, %v488_v21 }
  0x17   : > { %v495_v35 = vadd.f32 %v493_v31, %v492_v30 }
  0x18   : > { %436 = vperm.xlu2 %1001, %v427_v4  }
  0x19   : > { %v506_v37 = vperm.slane %v495_v35, 0 }
  0x1a   : > { %474 = vrot.lane.b32.xlu0 %v469_v5, %s1041_s17  ;;  %482 = vrot.lane.b32.xlu1 %v469_v5, %s1042_s18  ;;  %s417_s18 = scalar_lea.vmem %s1235_s3, %s949_s25 }
  0x20   : > { %1004 = vset.pattern.permute.xlu2 %v1043_v6 }
  0x21   : > { %456 = vperm.xlu2 %1004, %v426_v2  }
  0x22   : > { %443 = vperm.xlu0 %1002, %v426_v2   ;;  %447 = vperm.xlu1 %1003, %v427_v4  }
  0x29   : > { %1006 = vset.pattern.permute.xlu2 %v1040_v1 }
  0x2a   : > { %1005 = vset.pattern.permute.xlu1 %v1043_v6  ;;  %1007 = vset.pattern.permute.xlu0 %v1040_v1 }
  0x2b   : > { %460 = vperm.xlu1 %1005, %v427_v4  }
  0x33   : > { %1008 = vset.pattern.permute.xlu1 %v1040_v1 }
  0x6a   : > { %v432_v18 = vpop.permute.xlu2 %431 }
  0x6b   : > { %v440_v28 = vmul.f32 %v439_v22, %v432_v18 }
  0x72   : > { %v437_v20 = vpop.permute.xlu2 %436 }
  0x73   : > { %v441_v39 = vmul.f32 %v439_v22, %v437_v20 }
  0x7b   : > { %v457_v27 = vpop.permute.xlu2 %456 }
  0x7c   : > { %v464_v33 = vmul.f32 %v463_v26, %v457_v27 }
  0x84   : > { %v473_v7 = vpop.permute.xlu0 %472  ;;  %v481_v8 = vpop.permute.xlu1 %480 }
  0x85   : > { %v478_v9 = vadd.f32 %v473_v7, %v468_v3 }
  0x87   : > { %v486_v10 = vadd.f32 %v481_v8, %v478_v9 }
  0x89   : > { %498 = vperm.xlu2 %1006, %v486_v10  }
  0x8c   : > { %v475_v11 = vpop.permute.xlu0 %474  ;;  %v483_v12 = vpop.permute.xlu1 %482 }
  0x8d   : > { %v479_v13 = vadd.f32 %v475_v11, %v469_v5 }
  0x8f   : > { %v487_v15 = vadd.f32 %v483_v12, %v479_v13 }
  0x91   : > { %503 = vperm.xlu0 %1007, %v487_v15   ;;  %734 = vperm.xlu2 %1006, %v666_v14  }
  0x94   : > { %v444_v25 = vpop.permute.xlu0 %443  ;;  %v448_v32 = vpop.permute.xlu1 %447 }
  0x95   : > { %v451_v29 = vmul.f32 %v450_v23, %v444_v25  ;;  %v452_v40 = vmul.f32 %v450_v23, %v448_v32 }
  0x97   : > { %v453_v34 = vadd.f32 %v451_v29, %v440_v28  ;;  %v454_v44 = vadd.f32 %v452_v40, %v441_v39 }
  0x99   : > { %766 = vperm.xlu0 %1007, %v752_v16   ;;  %761 = vperm.xlu2 %1006, %v751_v17   ;;  %v466_v36 = vadd.f32 %v464_v33, %v453_v34 }
  0x9b   : > { %v509_v43 = vmul.f32 2.0, %v466_v36 }
  0x9d   : > { %v461_v41 = vpop.permute.xlu1 %460 }
  0x9e   : > { %v465_v45 = vmul.f32 %v463_v26, %v461_v41 }
  0xa0   : > { %v467_v47 = vadd.f32 %v465_v45, %v454_v44 }
  0xa2   : > { %v510_v51 = vmul.f32 2.0, %v467_v47 }
  0xe3   : > { %v499_v38 = vpop.permute.xlu2 %498 }
  0xe4   : > { %v507_v42 = vadd.f32 %v506_v37, %v499_v38 }
  0xe6   : > { %v511_v46 = vsub.f32 %v507_v42, %v509_v43 }
  0xe8   : > { %v513_v49 = vmax.f32 %v511_v46, 0.0 }
  0xea   : > { %v520_v54 = vand.u32 4294967280, %v513_v49  ;;  %v1147_v10 = vadd.f32 1e-08, %v513_v49 }
  0xec   : > { %v1133_v58 = vor.u32 %v520_v54, %v516_v53  ;;  %1009 = vrcp.f32 %v1147_v10  ;;  %v591_v40 = vand.u32 2147483648, %v1147_v10  ;;  %v589_v43 = vand.u32 2147483647, %v1147_v10 }
  0xee   : > { %v525_v61 = vsel %vm524_vm0, %v1133_v58, 2147483647  ;;  %v592_v48 = vor.u32 1.1754944e-38, %v591_v40 }
  0xf2   : > { %v1010_v17 = vpop.eup %1009 }
  0xf3   : > { %v581_v22 = vmul.f32 %v1010_v17, %v1147_v10 }
  0xf5   : > { %v582_v29 = vsub.f32 1.0, %v581_v22 }
  0xf7   : > { %v583_v33 = vmul.f32 %v1010_v17, %v582_v29 }
 0x103   : > { %v504_v50 = vpop.permute.xlu0 %503 }
 0x104   : > { %v508_v52 = vadd.f32 %v506_v37, %v504_v50  ;;  %v584_v37 = vadd.f32 %v1010_v17, %v583_v33  ;;  %v746_v33 = vld [vmem:[%s1239_s7] sm:$0xff] }
 0x106   : > { %v512_v55 = vsub.f32 %v508_v52, %v510_v51 }
 0x108   : > { %v514_v57 = vmax.f32 %v512_v55, 0.0  ;;  %v636_v55 = vld [vmem:[%s410_s15] sm:$0xff] }
 0x10a   : > { %v521_v59 = vand.u32 4294967280, %v514_v57  ;;  %v579_v11 = vadd.f32 1e-08, %v514_v57 }
 0x10c   : > { %v1135_v60 = vor.u32 %v521_v59, %v517_v56  ;;  %1011 = vrcp.f32 %v579_v11  ;;  %v606_v39 = vand.u32 2147483648, %v579_v11  ;;  %v604_v41 = vand.u32 2147483647, %v579_v11 }
 0x10e   : > { %v526_v62 = vsel %vm524_vm0, %v1135_v60, 2147483647  ;;  %v607_v47 = vor.u32 1.1754944e-38, %v606_v39 }
 0x10f   : > { %vm527_vm1 = vcmp.lt.s32.totalorder %v525_v61, %v526_v62 }
 0x110   : > { %v528_v63 = vsel %vm527_vm1, %v525_v61, %v526_v62  ;;  %vm586_vm1 = vweird.f32 %v1010_v17 }
 0x111   : > { %v529_v0 = vrot.slane %v528_v63, 4 }
 0x112   : > { %v1012_v19 = vpop.eup %1011 }
 0x113   : > { %vm530_vm2 = vcmp.lt.s32.totalorder %v528_v63, %v529_v0  ;;  %v596_v21 = vmul.f32 %v1012_v19, %v579_v11 }
 0x114   : > { %v531_v1 = vsel %vm530_vm2, %v528_v63, %v529_v0  ;;  %vm601_vm2 = vweird.f32 %v1012_v19 }
 0x115   : > { %v532_v2 = vrot.slane %v531_v1, 2  ;;  %v597_v28 = vsub.f32 1.0, %v596_v21 }
 0x117   : > { %vm533_vm3 = vcmp.lt.s32.totalorder %v531_v1, %v532_v2  ;;  %v598_v32 = vmul.f32 %v1012_v19, %v597_v28 }
 0x118   : > { %v534_v3 = vsel %vm533_vm3, %v531_v1, %v532_v2  ;;  %vm585_vm3 = vweird.f32 %v1147_v10  ;;  %v668_v1 = vld [vmem:[%s417_s18] sm:$0xf] }
 0x119   : > { %v535_v4 = vrot.slane %v534_v3, 1  ;;  %v599_v36 = vadd.f32 %v1012_v19, %v598_v32  ;;  %v664_v2 = vld [vmem:[%s1237_s5] sm:$0xff] }
 0x11b   : > { %vm536_vm4 = vcmp.lt.s32.totalorder %v534_v3, %v535_v4 }
 0x11c   : > { %v537_v5 = vsel %vm536_vm4, %v534_v3, %v535_v4  ;;  %vm600_vm4 = vweird.f32 %v579_v11  ;;  %v667_v4 = vld [vmem:[%s1238_s6 + $0x8] sm:$0xff] }
 0x11d   : > { %vm538_vm5 = vcmp.eq.s32.totalorder %v1133_v58, %v537_v5  ;;  %vm539_vm6 = vcmp.eq.s32.totalorder %v1135_v60, %v537_v5  ;;  %v665_v5 = vld [vmem:[%s1237_s5 + $0x8] sm:$0xff]  ;;  %739 = vperm.xlu1 %1008, %v667_v4  }
 0x11e   : > { %v540_v6 = vsel %vm538_vm5, 2147483647, %v1133_v58  ;;  %v541_v7 = vsel %vm539_vm6, 2147483647, %v1135_v60  ;;  %vm1155_vm5 = vmor %vm585_vm3, %vm586_vm1  ;;  %vm669_vm1 = vcmask 31744  }
 0x11f   : > { %v542_v8 = vsel %vm524_vm0, %v540_v6, 2147483647  ;;  %v543_v9 = vsel %vm524_vm0, %v541_v7, 2147483647  ;;  %v588_v46 = vsel %vm1155_vm5, %v1010_v17, %v584_v37 }
 0x120   : > { %vm544_vm7 = vcmp.lt.s32.totalorder %v542_v8, %v543_v9 }
 0x121   : > { %v545_v12 = vsel %vm544_vm7, %v542_v8, %v543_v9  ;;  %vm602_vm7 = vmor %vm600_vm4, %vm601_vm2  ;;  %v750_v8 = vld [vmem:[%s1240_s8] sm:$0xff] }
 0x122   : > { %v546_v13 = vrot.slane %v545_v12, 4  ;;  %v603_v45 = vsel %vm602_vm7, %v1012_v19, %v599_v36  ;;  %v662_v19 = vld [vmem:[%s1236_s4] sm:$0xff]  ;;  %v749_v36 = vld [vmem:[%s1239_s7 + $0x18] sm:$0xff] }
 0x124   : > { %vm547_vm8 = vcmp.lt.s32.totalorder %v545_v12, %v546_v13 }
 0x125   : > { %v548_v14 = vsel %vm547_vm8, %v545_v12, %v546_v13  ;;  %756 = vperm.xlu1 %1008, %v750_v8   ;;  %v753_v12 = vld [vmem:[%s1240_s8 + $0x18] sm:$0xff] }
 0x126   : > { %v549_v15 = vrot.slane %v548_v14, 2 }
 0x128   : > { %vm550_vm9 = vcmp.lt.s32.totalorder %v548_v14, %v549_v15 }
 0x129   : > { %v551_v16 = vsel %vm550_vm9, %v548_v14, %v549_v15 }
 0x12a   : > { %v552_v18 = vrot.slane %v551_v16, 1 }
 0x12c   : > { %vm553_vm10 = vcmp.lt.s32.totalorder %v551_v16, %v552_v18 }
 0x12d   : > { %v554_v20 = vsel %vm553_vm10, %v551_v16, %v552_v18  ;;  %vm605_vm10 = vcmp.eq.f32.partialorder %v604_v41, 8.507059e+37  ;;  %771 = vperm.xlu1 %1008, %v753_v12  }
 0x12e   : > { %vm555_vm11 = vcmp.eq.s32.totalorder %v540_v6, %v554_v20  ;;  %vm556_vm12 = vcmp.eq.s32.totalorder %v541_v7, %v554_v20  ;;  %v608_v51 = vsel %vm605_vm10, %v607_v47, %v603_v45  ;;  %v663_v20 = vld [vmem:[%s1236_s4 + $0x8] sm:$0xff]  ;;  %v767_v45 = vpop.permute.xlu0 %766 }
 0x12f   : > { %v557_v23 = vsel %vm555_vm11, 2147483647, %v540_v6  ;;  %v558_v24 = vsel %vm556_vm12, 2147483647, %v541_v7  ;;  %vm590_vm11 = vcmp.eq.f32.partialorder %v589_v43, 8.507059e+37 }
 0x130   : > { %v559_v25 = vsel %vm524_vm0, %v557_v23, 2147483647  ;;  %v560_v26 = vsel %vm524_vm0, %v558_v24, 2147483647  ;;  %v593_v52 = vsel %vm590_vm11, %v592_v48, %v588_v46 }
 0x131   : > { %vm561_vm13 = vcmp.lt.s32.totalorder %v559_v25, %v560_v26 }
 0x132   : > { %v562_v27 = vsel %vm561_vm13, %v559_v25, %v560_v26 }
 0x133   : > { %v563_v30 = vrot.slane %v562_v27, 4 }
 0x135   : > { %vm564_vm14 = vcmp.lt.s32.totalorder %v562_v27, %v563_v30 }
 0x136   : > { %v565_v31 = vsel %vm564_vm14, %v562_v27, %v563_v30  ;;  %vm637_vm14 = vcmask 130048   ;;  %v735_v27 = vpop.permute.xlu2 %734 }
 0x137   : > { %v566_v34 = vrot.slane %v565_v31, 2 }
 0x139   : > { %vm567_vm15 = vcmp.lt.s32.totalorder %v565_v31, %v566_v34 }
 0x13a   : > { %v568_v35 = vsel %vm567_vm15, %v565_v31, %v566_v34  ;;  %vm676_vm15 = vcmask 1043456   ;;  %v747_v34 = vld [vmem:[%s1239_s7 + $0x8] sm:$0xff] }
 0x13b   : > { %v569_v38 = vrot.slane %v568_v35, 1  ;;  %957 = vmatpush.msk.msra.mxu1 %vm676_vm15, %v668_v1 }
 0x13c   : > { %958 = vmatmul.msk.f32.vlgmr.msra.gmra.mxu1 %vm669_vm1, %v664_v2 }
 0x13d   : > { %vm570_vm6 = vcmp.lt.s32.totalorder %v568_v35, %v569_v38 }
 0x13e   : > { %v571_v44 = vsel %vm570_vm6, %v568_v35, %v569_v38  ;;  %v748_v35 = vld [vmem:[%s1239_s7 + $0x10] sm:$0xff]  ;;  %v762_v41 = vpop.permute.xlu2 %761 }
 0x13f   : > { %vm573_vm8 = vcmp.eq.s32.totalorder %v558_v24, %v571_v44  ;;  %vm572_vm9 = vcmp.eq.s32.totalorder %v557_v23, %v571_v44 }
 0x140   : > { %v575_v49 = vsel %vm573_vm8, 2147483647, %v558_v24  ;;  %v574_v50 = vsel %vm572_vm9, 2147483647, %v557_v23 }
 0x141   : > { %vm577_vm12 = vcmp.ne.s32.totalorder %v575_v49, %v1135_v60  ;;  %vm576_vm13 = vcmp.ne.s32.totalorder %v574_v50, %v1133_v58 }
 0x142   : > { %v611_v53 = vsel %vm577_vm12, %v608_v51, 0.0  ;;  %954 = vmatpush.msk.msra.mxu0 %vm577_vm12, %v608_v51  ;;  %v610_v54 = vsel %vm576_vm13, %v593_v52, 0.0 }
 0x143   : > { %v613_v56 = vsel %vm524_vm0, %v611_v53, 0.0  ;;  %v612_v57 = vsel %vm524_vm0, %v610_v54, 0.0 }
 0x144   : > { %v614_v59 = vadd.f32 %v613_v56, %v612_v57  ;;  %955 = vmatpush.msk.msra.mxu0 %vm576_vm13, %v593_v52  ;;  %959 = vmatmul.msk.f32.gmra.mxu1 %vm669_vm1, %v665_v5 }
 0x145   : > { %956 = vmatmul.msk.f32.vlgmr.msra.gmra.mxu0 %vm637_vm14, %v636_v55 }
 0x146   : > { %v615_v61 = vrot.slane %v614_v59, 4 }
 0x148   : > { %v616_v60 = vadd.f32 %v615_v61, %v614_v59 }
 0x14a   : > { %v617_v62 = vrot.slane %v616_v60, 2 }
 0x14c   : > { %v618_v63 = vadd.f32 %v617_v62, %v616_v60 }
 0x14e   : > { %v619_v58 = vrot.slane %v618_v63, 1 }
 0x150   : > { %v620_v0 = vadd.f32 %v619_v58, %v618_v63 }
 0x152   : > { %1013 = vrcp.f32 %v620_v0  ;;  %v632_v11 = vand.u32 2147483648, %v620_v0  ;;  %vm626_vm3 = vweird.f32 %v620_v0  ;;  %v630_v13 = vand.u32 2147483647, %v620_v0 }
 0x154   : > { %v633_v15 = vor.u32 1.1754944e-38, %v632_v11  ;;  %vm631_vm5 = vcmp.eq.f32.partialorder %v630_v13, 8.507059e+37 }
 0x158   : > { %v1014_v3 = vpop.eup %1013 }
 0x159   : > { %v622_v6 = vmul.f32 %v1014_v3, %v620_v0  ;;  %vm627_vm2 = vweird.f32 %v1014_v3 }
 0x15a   : > { %vm628_vm4 = vmor %vm626_vm3, %vm627_vm2 }
 0x15b   : > { %v623_v7 = vsub.f32 1.0, %v622_v6 }
 0x15d   : > { %v624_v9 = vmul.f32 %v1014_v3, %v623_v7 }
 0x15f   : > { %v625_v10 = vadd.f32 %v1014_v3, %v624_v9 }
 0x161   : > { %v629_v14 = vsel %vm628_vm4, %v1014_v3, %v625_v10 }
 0x162   : > { %v634_v17 = vsel %vm631_vm5, %v633_v15, %v629_v14 }
 0x18f   : > { %v740_v28 = vpop.permute.xlu1 %739 }
 0x197   : > { %v757_v37 = vpop.permute.xlu1 %756 }
 0x19f   : > { %v772_v49 = vpop.permute.xlu1 %771 }
 0x1b9   : > { %v697_v21 = vpop.f32.mrf.mxu1 }
 0x1c1   : > { %v700_v23 = vpop.f32.mrf.mxu1 }
 0x1c2   : > { %v658_v16 = vpop.f32.mrf.mxu0 }
 0x1c3   : > { %v661_v18 = vmul.f32 %v658_v16, %v634_v17 }
 0x1c5   : > { %724 = vmatpush.msra.mxu2 %v661_v18 }
 0x1c6   : > { %960 = vmatmul.msk.f32.vlgmr.msra.gmra.mxu2 %vm524_vm0, %v662_v19 }
 0x1ce   : > { %961 = vmatmul.msk.f32.gmra.mxu2 %vm524_vm0, %v663_v20 }
 0x249   : > { %v726_v22 = vpop.f32.mrf.mxu2 }
 0x24a   : > { %v727_v24 = vadd.f32 %v726_v22, %v697_v21 }
 0x24c   : > { %v742_v30 = vadd.f32 %v735_v27, %v727_v24 }
 0x24e   : > { %v744_v32 = vmax.f32 %v742_v30, 0.0 }
 0x251   : > { %v729_v25 = vpop.f32.mrf.mxu2 }
 0x252   : > { %v730_v26 = vadd.f32 %v729_v25, %v700_v23 }
 0x254   : > { %v743_v29 = vadd.f32 %v740_v28, %v730_v26 }
 0x256   : > { %v745_v31 = vmax.f32 %v743_v29, 0.0 }
 0x258   : > { %800 = vmatpush.msrb.mxu0 %v745_v31  ;;  %970 = vmatpush.msra.mxu3 %v745_v31 }
 0x25a   : > { %801 = vmatpush.msrb.mxu0 %v744_v32  ;;  %971 = vmatpush.msra.mxu3 %v744_v32 }
 0x25b   : > { %962 = vmatmul.msk.f32.vlgmr.msrb.gmra.mxu0 %vm637_vm14, %v746_v33  ;;  %963 = vmatmul.msk.f32.vlgmr.msra.gmra.mxu3 %vm637_vm14, %v747_v34 }
 0x263   : > { %964 = vmatmul.msk.f32.gmra.mxu3 %vm637_vm14, %v748_v35 }
 0x26b   : > { %965 = vmatmul.msk.f32.gmra.mxu3 %vm637_vm14, %v749_v36 }
 0x2d8   : > { %v803_v38 = vpop.f32.mrf.mxu0 }
 0x2d9   : > { %v804_v39 = vadd.f32 %v803_v38, %v757_v37 }
 0x2db   : > { %v815_v40 = vmax.f32 %v804_v39, 0.0 }
 0x2dd   : > { %819 = vst.msk [vmem:[%s425_s27] sm:$0xff] %vm524_vm0, %v815_v40 }
 0x2de   : > { %v806_v42 = vpop.f32.mrf.mxu3 }
 0x2df   : > { %v807_v43 = vadd.f32 %v806_v42, %v762_v41 }
 0x2e1   : > { %v816_v44 = vmax.f32 %v807_v43, 0.0 }
 0x2e3   : > { %820 = vst.msk [vmem:[%s425_s27 + $0x8] sm:$0xff] %vm524_vm0, %v816_v44 }
 0x2e6   : > { %v809_v46 = vpop.f32.mrf.mxu3 }
 0x2e7   : > { %v810_v47 = vadd.f32 %v809_v46, %v767_v45 }
 0x2e9   : > { %v817_v48 = vmax.f32 %v810_v47, 0.0 }
 0x2eb   : > { %821 = vst.msk [vmem:[%s425_s27 + $0x10] sm:$0xff] %vm524_vm0, %v817_v48 }
 0x2ee   : > { %v812_v50 = vpop.f32.mrf.mxu3 }
 0x2ef   : > { %v813_v51 = vadd.f32 %v812_v50, %v772_v49 }
 0x2f1   : > { %v818_v52 = vmax.f32 %v813_v51, 0.0 }
 0x2f3   : > { %822 = vst.msk [vmem:[%s425_s27 + $0x18] sm:$0xff] %vm524_vm0, %v818_v52 }
 0x2f4 PF: > { %s19_s11 = sadd.s32 1, %s1037_s11   ;;  %s1244_s30 = smov %s1033_s10 }
 0x2f5   : > { %p16_p5 = scmp.ge.s32.totalorder %s19_s11, 4   ;;  %s1245_s10 = smov %s1247_s12 }
 0x2f7   :  { %18 = sbr.rel (!%p16_p5) target bundleno = 2 (0x2), region = 95 }

</bundles_post_ra>
